<compile_context>
chip_gen: v7x
topology: tpu7x:2x2x1
jax: 0.10.0
libtpu: 0.0.40
codegen_flags: <defaults>
</compile_context>

<pallas_src>
import functools

import jax
import jax.numpy as jnp
from jax.experimental import pallas as pl
from jax.experimental.pallas import tpu as pltpu


def _round_up(x, m):
    return ((x + m - 1) // m) * m


def _focal_loss_kernel(pred_ref, tgt_ref, out_ref, *, alpha, gamma,
                       num_classes, hw, tile_rows, need_mask, approx_recip):
    """pred_ref: (1, C, tile_rows, 128) logits (dense sublane x lane slabs).
       tgt_ref : (1, tile_rows, 128) int32 class indices.
       out_ref : (1, 8, 128) f32 per-batch partial sums (resident across t)."""
    t = pl.program_id(1)

    @pl.when(t == 0)
    def _():
        out_ref[...] = jnp.zeros_like(out_ref)

    tgt = tgt_ref[0]                                           # (tile_rows, 128) i32

    # Per-class logit slabs, unrolled over the small static class axis.
    rows = [pred_ref[0, c].astype(jnp.float32)                 # (tile_rows, 128)
            for c in range(num_classes)]

    # Per-pixel max over classes (elementwise VPU max, no cross-lane work).
    m = rows[0]
    for c in range(1, num_classes):
        m = jnp.maximum(m, rows[c])

    # sum_k exp(x_k - m) plus selection of the target class, unrolled over C.
    sum_exp = jnp.zeros_like(m)
    sel_exp = jnp.zeros_like(m)       # exp(x_target - m)   (reused for pt)
    sel_shift = jnp.zeros_like(m)     # x_target - m
    for c in range(num_classes):
        shifted = rows[c] - m
        e = jnp.exp(shifted)
        sum_exp = sum_exp + e
        is_c = tgt == c
        sel_exp = jnp.where(is_c, e, sel_exp)
        sel_shift = jnp.where(is_c, shifted, sel_shift)

    # ce = logsumexp(x) - x_target ; pt = softmax(x)[target]  (no second exp).
    ce = jnp.log(sum_exp) - sel_shift
    if approx_recip:
        pt = sel_exp * pl.reciprocal(sum_exp, approx=True)     # EUP slot
    else:
        pt = sel_exp / sum_exp

    one_minus_pt = 1.0 - pt
    if isinstance(gamma, int):
        w = one_minus_pt ** gamma                 # integer pow -> multiplies
    else:
        w = jnp.power(jnp.clip(one_minus_pt, 0.0, 1.0), gamma)

    focal = alpha * w * ce                                     # (tile_rows, 128)

    def accumulate(f):
        # Fold rows onto 8 sublanes: vreg-aligned reshape + pure VPU adds,
        # then accumulate into the small resident (8,128) block.
        part = jnp.sum(f.reshape(tile_rows // 8, 8, 128), axis=0)
        out_ref[0, :, :] = out_ref[0, :, :] + part

    if need_mask:
        # Only the last tile can contain padded pixels / out-of-range rows.
        last = pl.num_programs(1) - 1

        @pl.when(t == last)
        def _():
            r = jax.lax.broadcasted_iota(jnp.int32, (tile_rows, 128), 0)
            lane = jax.lax.broadcasted_iota(jnp.int32, (tile_rows, 128), 1)
            px = (t * tile_rows + r) * 128 + lane
            accumulate(jnp.where(px < hw, focal, 0.0))

        @pl.when(t != last)
        def _():
            accumulate(focal)
    else:
        accumulate(focal)


def focal_loss(pred, target, *, alpha=1.0, gamma=2, num_classes=3,
               reduction="mean", tile_rows=1024, approx_recip=False,
               vmem_limit_bytes=32 * 1024 * 1024):
    """pred: (N, C, H, W) float logits; target: (N, H, W) int class indices."""
    N, C, H, W = pred.shape
    assert C == num_classes
    HW = H * W
    P = N * HW

    # Flatten the spatial axes (free) and pad the pixel axis to a multiple of
    # 8*128 so it reshapes into dense (R, 128) slabs with R a multiple of 8.
    HW_pad = _round_up(HW, 8 * 128)
    pred_flat = pred.reshape(N, C, HW)
    tgt_flat = target.reshape(N, HW)
    if tgt_flat.dtype != jnp.int32:
        tgt_flat = tgt_flat.astype(jnp.int32)
    if HW_pad != HW:
        pred_flat = jnp.pad(pred_flat, ((0, 0), (0, 0), (0, HW_pad - HW)))
        tgt_flat = jnp.pad(tgt_flat, ((0, 0), (0, HW_pad - HW)))
    R = HW_pad // 128
    pred_4d = pred_flat.reshape(N, C, R, 128)
    tgt_3d = tgt_flat.reshape(N, R, 128)

    # Row-tile selection: multiple of 8, capped at R.  Default 1024 rows
    # (131072 pixels / ~2 MiB pred traffic per step) amortizes the per-grid-step
    # overhead on all generations while staying tiny relative to VMEM.
    tile_rows = max(8, (min(int(tile_rows), R) // 8) * 8)
    num_tiles = -(-R // tile_rows)
    # Mask is needed iff the last tile contains padded pixels or overruns R.
    need_mask = (num_tiles * tile_rows * 128) != HW

    kernel = functools.partial(
        _focal_loss_kernel, alpha=float(alpha), gamma=gamma, num_classes=C,
        hw=HW, tile_rows=tile_rows, need_mask=need_mask,
        approx_recip=approx_recip)

    partials = pl.pallas_call(
        kernel,
        out_shape=jax.ShapeDtypeStruct((N, 8, 128), jnp.float32),
        grid_spec=pltpu.PrefetchScalarGridSpec(
            num_scalar_prefetch=0,
            grid=(N, num_tiles),
            in_specs=[
                pl.BlockSpec((1, C, tile_rows, 128), lambda n, t: (n, 0, t, 0)),
                pl.BlockSpec((1, tile_rows, 128), lambda n, t: (n, t, 0)),
            ],
            # One small (8,128) partial block per batch element; same block index
            # across the reduction (t) axis -> stays resident in VMEM.
            out_specs=pl.BlockSpec((1, 8, 128), lambda n, t: (n, 0, 0)),
        ),
        compiler_params=pltpu.CompilerParams(
            dimension_semantics=("parallel", "arbitrary"),
            vmem_limit_bytes=vmem_limit_bytes),
    )(pred_4d, tgt_3d)

    total = jnp.sum(partials)          # tiny N*8*128 reduce, done by XLA
    if reduction == "mean":
        return total / P
    elif reduction == "sum":
        return total
    else:
        # TODO(synk): reduction='none' would need a per-pixel output spec;
        # only 'mean' / 'sum' are emitted by this kernel.
        raise NotImplementedError("reduction='none' not implemented in kernel")


def _reference_focal_loss(pred, target, alpha=1.0, gamma=2, reduction="mean"):
    # Pure-JAX reference mirroring the PyTorch module.
    N, C, H, W = pred.shape
    logits = jnp.transpose(pred, (0, 2, 3, 1)).reshape(-1, C).astype(jnp.float32)
    tgt = target.reshape(-1)
    lse = jax.scipy.special.logsumexp(logits, axis=-1)
    sel = jnp.take_along_axis(logits, tgt[:, None], axis=-1)[:, 0]
    ce = lse - sel
    pt = jnp.exp(-ce)
    focal = alpha * (1.0 - pt) ** gamma * ce
    return jnp.mean(focal) if reduction == "mean" else jnp.sum(focal)


if __name__ == "__main__":
    key = jax.random.PRNGKey(0)
    k1, k2, k3, k4, k5, k6 = jax.random.split(key, 6)

    # Case 1: module defaults (num_classes=3), HW not a multiple of 1024
    # (exercises wrapper pad + last-tile mask, single tile).
    N, C, H, W = 2, 3, 16, 16
    pred = jax.random.normal(k1, (N, C, H, W), dtype=jnp.float32)
    target = jax.random.randint(k2, (N, H, W), 0, C, dtype=jnp.int32)

    loss = jax.block_until_ready(
        focal_loss(pred, target, alpha=1.0, gamma=2, num_classes=C,
                   reduction="mean"))
    ref = _reference_focal_loss(pred, target, reduction="mean")
    assert jnp.allclose(loss, ref, rtol=1e-5, atol=1e-5), (loss, ref)

    # Case 2: ragged pixel count (H*W=160), 'sum' reduction.
    N2, C2, H2, W2 = 2, 3, 10, 16
    pred2 = jax.random.normal(k3, (N2, C2, H2, W2), dtype=jnp.float32)
    target2 = jax.random.randint(k4, (N2, H2, W2), 0, C2, dtype=jnp.int32)

    loss2 = jax.block_until_ready(
        focal_loss(pred2, target2, alpha=1.0, gamma=2, num_classes=C2,
                   reduction="sum"))
    ref2 = _reference_focal_loss(pred2, target2, reduction="sum")
    assert jnp.allclose(loss2, ref2, rtol=1e-5, atol=1e-5), (loss2, ref2)

    # Case 3: multi-tile accumulation along the reduction axis, including a
    # ragged last row-tile (tile_rows does not divide R) -> masked tail.
    N3, C3, H3, W3 = 1, 3, 64, 64          # HW = 4096, R = 32
    pred3 = jax.random.normal(k5, (N3, C3, H3, W3), dtype=jnp.float32)
    target3 = jax.random.randint(k6, (N3, H3, W3), 0, C3, dtype=jnp.int32)

    loss3a = jax.block_until_ready(
        focal_loss(pred3, target3, num_classes=C3, reduction="mean",
                   tile_rows=8))           # 4 even tiles, no mask
    loss3b = jax.block_until_ready(
        focal_loss(pred3, target3, num_classes=C3, reduction="mean",
                   tile_rows=24))          # ragged last tile -> masked
    ref3 = _reference_focal_loss(pred3, target3, reduction="mean")
    assert jnp.allclose(loss3a, ref3, rtol=1e-5, atol=1e-5), (loss3a, ref3)
    assert jnp.allclose(loss3b, ref3, rtol=1e-5, atol=1e-5), (loss3b, ref3)

    print("KERNEL_OK")
</pallas_src>

<mosaic_0001>
module attributes {stable_mosaic.version = 11 : i64} {
  func.func @_focal_loss_kernel(%arg0: i32, %arg1: i32, %arg2: memref<1x3x8x128xf32, #tpu.memory_space<vmem>>, %arg3: memref<1x8x128xi32, #tpu.memory_space<vmem>>, %arg4: memref<1x8x128xf32, #tpu.memory_space<vmem>>) attributes {dimension_semantics = [#tpu.dimension_semantics<parallel>, #tpu.dimension_semantics<arbitrary>], iteration_bounds = array<i64: 2, 1>, scalar_prefetch = 0 : i64, scratch_operands = 0 : i64, tpu.core_type = #tpu.core_type<tc>, window_params = [{transform_indices = @transform_0, window_bounds = array<i64: 1, 3, 8, 128>}, {transform_indices = @transform_1, window_bounds = array<i64: 1, 8, 128>}, {transform_indices = @transform_2, window_bounds = array<i64: 1, 8, 128>}]} {
    %c0_i32 = arith.constant 0 : i32
    %0 = arith.cmpi eq, %arg1, %c0_i32 : i32
    %1 = arith.extui %0 : i1 to i32
    %c0_i32_0 = arith.constant 0 : i32
    %2 = arith.cmpi ne, %1, %c0_i32_0 : i32
    scf.if %2 {
      %cst_22 = arith.constant 0.000000e+00 : f32
      %52 = vector.broadcast %cst_22 : f32 to vector<1x8x128xf32>
      %c0_23 = arith.constant 0 : index
      %c0_24 = arith.constant 0 : index
      %c0_25 = arith.constant 0 : index
      %53 = vector.load %arg4[%c0_23, %c0_24, %c0_25] : memref<1x8x128xf32, #tpu.memory_space<vmem>>, vector<1x8x128xf32>
      tpu.vector_store %arg4[%c0_23, %c0_24, %c0_25], %52 {strides = array<i32>} : memref<1x8x128xf32, #tpu.memory_space<vmem>>, vector<1x8x128xf32>,
    } else {
    }
    %c0 = arith.constant 0 : index
    %c0_1 = arith.constant 0 : index
    %c0_2 = arith.constant 0 : index
    %3 = vector.load %arg3[%c0, %c0_1, %c0_2] : memref<1x8x128xi32, #tpu.memory_space<vmem>>, vector<1x8x128xi32>
    %4 = vector.shape_cast %3 : vector<1x8x128xi32> to vector<8x128xi32>
    %c0_3 = arith.constant 0 : index
    %c0_4 = arith.constant 0 : index
    %c0_5 = arith.constant 0 : index
    %c0_6 = arith.constant 0 : index
    %5 = vector.load %arg2[%c0_3, %c0_4, %c0_5, %c0_6] : memref<1x3x8x128xf32, #tpu.memory_space<vmem>>, vector<1x1x8x128xf32>
    %6 = vector.shape_cast %5 : vector<1x1x8x128xf32> to vector<8x128xf32>
    %c0_7 = arith.constant 0 : index
    %c1 = arith.constant 1 : index
    %c0_8 = arith.constant 0 : index
    %c0_9 = arith.constant 0 : index
    %7 = vector.load %arg2[%c0_7, %c1, %c0_8, %c0_9] : memref<1x3x8x128xf32, #tpu.memory_space<vmem>>, vector<1x1x8x128xf32>
    %8 = vector.shape_cast %7 : vector<1x1x8x128xf32> to vector<8x128xf32>
    %c0_10 = arith.constant 0 : index
    %c2 = arith.constant 2 : index
    %c0_11 = arith.constant 0 : index
    %c0_12 = arith.constant 0 : index
    %9 = vector.load %arg2[%c0_10, %c2, %c0_11, %c0_12] : memref<1x3x8x128xf32, #tpu.memory_space<vmem>>, vector<1x1x8x128xf32>
    %10 = vector.shape_cast %9 : vector<1x1x8x128xf32> to vector<8x128xf32>
    %11 = arith.maximumf %6, %8 : vector<8x128xf32>
    %12 = arith.maximumf %11, %10 : vector<8x128xf32>
    %cst = arith.constant 0.000000e+00 : f32
    %13 = vector.broadcast %cst : f32 to vector<8x128xf32>
    %cst_13 = arith.constant 0.000000e+00 : f32
    %14 = vector.broadcast %cst_13 : f32 to vector<8x128xf32>
    %cst_14 = arith.constant 0.000000e+00 : f32
    %15 = vector.broadcast %cst_14 : f32 to vector<8x128xf32>
    %16 = arith.subf %6, %12 : vector<8x128xf32>
    %17 = math.exp %16 : vector<8x128xf32>
    %18 = arith.addf %13, %17 : vector<8x128xf32>
    %c0_i32_15 = arith.constant 0 : i32
    %19 = vector.broadcast %c0_i32_15 : i32 to vector<8x128xi32>
    %20 = arith.cmpi eq, %4, %19 : vector<8x128xi32>
    %21 = arith.select %20, %17, %14 : vector<8x128xi1>, vector<8x128xf32>
    %22 = arith.select %20, %16, %15 : vector<8x128xi1>, vector<8x128xf32>
    %23 = arith.subf %8, %12 : vector<8x128xf32>
    %24 = math.exp %23 : vector<8x128xf32>
    %25 = arith.addf %18, %24 : vector<8x128xf32>
    %c1_i32 = arith.constant 1 : i32
    %26 = vector.broadcast %c1_i32 : i32 to vector<8x128xi32>
    %27 = arith.cmpi eq, %4, %26 : vector<8x128xi32>
    %28 = arith.select %27, %24, %21 : vector<8x128xi1>, vector<8x128xf32>
    %29 = arith.select %27, %23, %22 : vector<8x128xi1>, vector<8x128xf32>
    %30 = arith.subf %10, %12 : vector<8x128xf32>
    %31 = math.exp %30 : vector<8x128xf32>
    %32 = arith.addf %25, %31 : vector<8x128xf32>
    %c2_i32 = arith.constant 2 : i32
    %33 = vector.broadcast %c2_i32 : i32 to vector<8x128xi32>
    %34 = arith.cmpi eq, %4, %33 : vector<8x128xi32>
    %35 = arith.select %34, %31, %28 : vector<8x128xi1>, vector<8x128xf32>
    %36 = arith.select %34, %30, %29 : vector<8x128xi1>, vector<8x128xf32>
    %37 = math.log %32 : vector<8x128xf32>
    %38 = arith.subf %37, %36 : vector<8x128xf32>
    %39 = arith.divf %35, %32 : vector<8x128xf32>
    %cst_16 = arith.constant 1.000000e+00 : f32
    %40 = vector.broadcast %cst_16 : f32 to vector<8x128xf32>
    %41 = arith.subf %40, %39 : vector<8x128xf32>
    %42 = arith.mulf %41, %41 : vector<8x128xf32>
    %cst_17 = arith.constant 1.000000e+00 : f32
    %43 = vector.broadcast %cst_17 : f32 to vector<8x128xf32>
    %44 = arith.mulf %43, %42 : vector<8x128xf32>
    %45 = arith.mulf %44, %38 : vector<8x128xf32>
    %c0_i32_18 = arith.constant 0 : i32
    %46 = arith.cmpi eq, %arg1, %c0_i32_18 : i32
    %47 = arith.extui %46 : i1 to i32
    %c0_i32_19 = arith.constant 0 : i32
    %48 = arith.cmpi ne, %47, %c0_i32_19 : i32
    scf.if %48 {
      %52 = tpu.iota {dimensions = array<i32: 0>} : vector<8x128xi32>
      %53 = tpu.iota {dimensions = array<i32: 1>} : vector<8x128xi32>
      %c8_i32 = arith.constant 8 : i32
      %54 = arith.muli %arg1, %c8_i32 : i32
      %55 = vector.broadcast %54 : i32 to vector<8x128xi32>
      %56 = arith.addi %55, %52 : vector<8x128xi32>
      %c128_i32 = arith.constant 128 : i32
      %57 = vector.broadcast %c128_i32 : i32 to vector<8x128xi32>
      %58 = arith.muli %56, %57 : vector<8x128xi32>
      %59 = arith.addi %58, %53 : vector<8x128xi32>
      %c256_i32 = arith.constant 256 : i32
      %60 = vector.broadcast %c256_i32 : i32 to vector<8x128xi32>
      %61 = arith.cmpi slt, %59, %60 : vector<8x128xi32>
      %cst_22 = arith.constant 0.000000e+00 : f32
      %62 = vector.broadcast %cst_22 : f32 to vector<8x128xf32>
      %63 = arith.select %61, %45, %62 : vector<8x128xi1>, vector<8x128xf32>
      %64 = vector.shape_cast %63 : vector<8x128xf32> to vector<1x8x128xf32>
      %cst_23 = arith.constant dense<0.000000e+00> : vector<8x128xf32>
      %65 = vector.multi_reduction <add>, %64, %cst_23 [0] : vector<1x8x128xf32> to vector<8x128xf32>
      %c0_24 = arith.constant 0 : index
      %c0_25 = arith.constant 0 : index
      %c0_26 = arith.constant 0 : index
      %66 = vector.load %arg4[%c0_24, %c0_25, %c0_26] : memref<1x8x128xf32, #tpu.memory_space<vmem>>, vector<1x8x128xf32>
      %67 = vector.shape_cast %66 : vector<1x8x128xf32> to vector<8x128xf32>
      %68 = arith.addf %67, %65 : vector<8x128xf32>
      %c0_27 = arith.constant 0 : index
      %c0_28 = arith.constant 0 : index
      %c0_29 = arith.constant 0 : index
      %69 = vector.load %arg4[%c0_27, %c0_28, %c0_29] : memref<1x8x128xf32, #tpu.memory_space<vmem>>, vector<1x8x128xf32>
      %70 = vector.shape_cast %69 : vector<1x8x128xf32> to vector<8x128xf32>
      %71 = vector.shape_cast %68 : vector<8x128xf32> to vector<1x8x128xf32>
      tpu.vector_store %arg4[%c0_27, %c0_28, %c0_29], %71 {strides = array<i32>} : memref<1x8x128xf32, #tpu.memory_space<vmem>>, vector<1x8x128xf32>,
    } else {
    }
    %c0_i32_20 = arith.constant 0 : i32
    %49 = arith.cmpi ne, %arg1, %c0_i32_20 : i32
    %50 = arith.extui %49 : i1 to i32
    %c0_i32_21 = arith.constant 0 : i32
    %51 = arith.cmpi ne, %50, %c0_i32_21 : i32
    scf.if %51 {
      %52 = vector.shape_cast %45 : vector<8x128xf32> to vector<1x8x128xf32>
      %cst_22 = arith.constant dense<0.000000e+00> : vector<8x128xf32>
      %53 = vector.multi_reduction <add>, %52, %cst_22 [0] : vector<1x8x128xf32> to vector<8x128xf32>
      %c0_23 = arith.constant 0 : index
      %c0_24 = arith.constant 0 : index
      %c0_25 = arith.constant 0 : index
      %54 = vector.load %arg4[%c0_23, %c0_24, %c0_25] : memref<1x8x128xf32, #tpu.memory_space<vmem>>, vector<1x8x128xf32>
      %55 = vector.shape_cast %54 : vector<1x8x128xf32> to vector<8x128xf32>
      %56 = arith.addf %55, %53 : vector<8x128xf32>
      %c0_26 = arith.constant 0 : index
      %c0_27 = arith.constant 0 : index
      %c0_28 = arith.constant 0 : index
      %57 = vector.load %arg4[%c0_26, %c0_27, %c0_28] : memref<1x8x128xf32, #tpu.memory_space<vmem>>, vector<1x8x128xf32>
      %58 = vector.shape_cast %57 : vector<1x8x128xf32> to vector<8x128xf32>
      %59 = vector.shape_cast %56 : vector<8x128xf32> to vector<1x8x128xf32>
      tpu.vector_store %arg4[%c0_26, %c0_27, %c0_28], %59 {strides = array<i32>} : memref<1x8x128xf32, #tpu.memory_space<vmem>>, vector<1x8x128xf32>,
    } else {
    }
    return
  }
  func.func @transform_0(%arg0: i32, %arg1: i32) -> (i32, i32, i32, i32) {
    %c0_i32 = arith.constant 0 : i32
    %c0_i32_0 = arith.constant 0 : i32
    %c0_i32_1 = arith.constant 0 : i32
    return %arg0, %c0_i32, %arg1, %c0_i32_0 : i32, i32, i32, i32
  }
  func.func @transform_1(%arg0: i32, %arg1: i32) -> (i32, i32, i32) {
    %c0_i32 = arith.constant 0 : i32
    %c0_i32_0 = arith.constant 0 : i32
    return %arg0, %arg1, %c0_i32 : i32, i32, i32
  }
  func.func @transform_2(%arg0: i32, %arg1: i32) -> (i32, i32, i32) {
    %c0_i32 = arith.constant 0 : i32
    %c0_i32_0 = arith.constant 0 : i32
    %c0_i32_1 = arith.constant 0 : i32
    return %arg0, %c0_i32, %c0_i32_0 : i32, i32, i32
  }
}

</mosaic_0001>

<bundles_post_ra>
// kernel: tpu_custom_call.1
= control target key start
LH: loop header
LB: loop body
LE: loop exit
PB: predicated region body
PF: predicated region fallthrough
CT: control target
= control target key end

     0   :  { %7 = vsyncpa [#allocation3], 0  ;;  %s889_s0 = inlined_call_operand.hbm [shape: f32[2,3,8,128], index: 0, kind: input, shape index: {}]   ;;  %s890_s1 = inlined_call_operand.hbm [shape: s32[2,8,128], index: 1, kind: input, shape index: {}]   ;;  %s891_s2 = inlined_call_operand.hbm [shape: f32[2,8,128], index: 2, kind: output, shape index: {}]  }
   0x1   :  { %9 = vsyncpa [#allocation3 + $0x1], 0 }
   0x2   :  { %10 = vsyncpa [#allocation6], 0 }
   0x3   :  { %12 = vsyncpa [#allocation6 + $0x1], 0 }
   0x4   :  { %13 = vsyncpa [#allocation4], 0 }
   0x5   :  { %15 = vsyncpa [#allocation4 + $0x1], 0  ;;  %s670_s9 = smov 0   ;;  %s672_s10 = smov 0  }
   0x6   :  { %s674_s11 = smov 0   ;;  %s676_s12 = smov 0  }
   0x7   :  { %s678_s13 = smov 0   ;;  %s680_s14 = smov 0  }
   0x8 LB: > { %s403_s15 = sadd.s32 4294967295, %s648_s14   ;;  %s404_s16 = sadd.s32 4294967294, %s648_s14   ;;  %s648_s14 = sphi %s680_s14, %s21_s14   ;;  %s644_s13 = sphi %s678_s13, %s910_s13   ;;  %s640_s12 = sphi %s676_s12, %s909_s12   ;;  %s636_s11 = sphi %s674_s11, %s908_s11   ;;  %s632_s10 = sphi %s672_s10, %s907_s10   ;;  %s628_s9 = sphi %s670_s9, %s906_s9  }
   0x9   : > { %s33_s17 = sadd.s32 1, %s644_s13  ;;  %s42_s18 = sadd.s32 1, %s636_s11 }
   0xa   : > { %p35_p0 = scmp.ge.s32.totalorder %s33_s17, 2  ;;  %p49_p1 = scmp.ne.s32.totalorder %s636_s11, %s632_s10 }
   0xb   : > { %p50_p2 = scmp.eq.s32.totalorder %s648_s14, 0  ;;  %p55_p3 = scmp.ne.s32.totalorder %s632_s10, %s628_s9 }
   0xc   : > { %s912_s17 = smov (%p35_p0, %s33_s17), 0  ;;  %p56_p5 = scmp.eq.s32.totalorder %s403_s15, 0 }
   0xd   : > { %p711_p4 = por %p50_p2, %p49_p1  ;;  %s37_s20 = ssub.s32 %s644_s13, %s912_s17 }
   0xe   : > { %p107_p6 = scmp.eq.s32.totalorder %s403_s15, 1  ;;  %p40_p7 = scmp.eq.s32.totalorder %s37_s20, 0 }
   0xf   : > { %p717_p8 = por %p56_p5, %p55_p3  ;;  %p113_p10 = scmp.eq.s32.totalorder %s404_s16, 1 }
  0x10   : > { %p721_p9 = por %p107_p6, %p49_p1  ;;  %p439_p13 = scmp.lt.s32.totalorder %s648_s14, 2 }
  0x11   : > { %s895_s21 = scalar_select %p717_p8, 1, 0 }
  0x12   : > { %s896_s22 = scalar_select %p721_p9, 1, 0 }
  0x13   : > { %s726_s23 = scalar_select %p40_p7, %s636_s11, %s42_s18  }
  0x14   : > { %p728_p11 = por %p113_p10, %p55_p3  ;;  %s735_s25 = sand.u32 1, %s636_s11  }
  0x15   : > { %s419_s26 = smul.u32 24, %s735_s25  ;;  %p741_p0 = pnand %p439_p13, %p711_p4 }
  0x16   : > { %s897_s24 = scalar_select %p728_p11, 1, 0 }
  0x17   : > { %s420_s27 = smul.u32 384, %s644_s13  ;;  %s137_s4 = scalar_lea.vmem [#allocation2], %s419_s26 }
  0x18   : > { %s145_s5 = sshll.u32 %s137_s4, 4  ;;  %s134_s6 = scalar_lea.sflag [#allocation3], %s735_s25  ;;  %s750_s5 = int_to_ptr.vmem [resolvable:$true] %s145_s5 }
  0x19   : > { %s748_s3 = scalar_lea.hbm %s889_s0, %s420_s27  ;;  %p504_p3 = pneg %p741_p0 }
  0x1a   : > { %s502_s7 = scalar_lea.hbm %s748_s3, 384  ;;  %s507_s16 = scalar_lea.hbm %s889_s0, 768 }
  0x1b   : > { %p503_p2 = scmp.ne.s32.totalorder %s748_s3, %s502_s7  ;;  %p508_p6 = scmp.lt.u32.totalorder %s748_s3, %s889_s0 }
  0x1c   : > { %p509_p7 = scmp.lt.u32.totalorder %s507_s16, %s502_s7  ;;  %p511_p13 = scmp.lt.u32.totalorder %s502_s7, %s748_s3 }
  0x1d   : > { %p505_p4 = pnand %p504_p3, %p503_p2 }
  0x1e   : > { %p510_p10 = por %p509_p7, %p508_p6 }
  0x1f   : > { %p506_p5 = pneg %p505_p4 }
  0x20   : > { %p512_p12 = por %p511_p13, %p510_p10 }
  0x22   : > { %p513_p1 = pnand %p512_p12, %p506_p5 }
  0x24   : > { %516 = shalt.err (!%p513_p1)
}
  0x25   : > { %s517_s20 = scalar_lea.vmem %s750_s5, 384  ;;  %s650_s26 = smov [#allocation2]  }
  0x26   : > { %p518_p2 = scmp.ne.s32.totalorder %s750_s5, %s517_s20  ;;  %s522_s27 = sshll.u32 %s650_s26, 4  ;;  %s523_s27 = int_to_ptr.vmem [resolvable:$false] %s522_s27 }
  0x27   : > { %s524_s29 = scalar_lea.vmem %s523_s27, 768  ;;  %p525_p9 = scmp.lt.s32.totalorder %s750_s5, %s523_s27 }
  0x28   : > { %p520_p4 = pnand %p518_p2, %p504_p3  ;;  %p526_p6 = scmp.lt.s32.totalorder %s524_s29, %s517_s20 }
  0x2a   : > { %p521_p11 = pneg %p520_p4  ;;  %p527_p7 = por %p526_p6, %p525_p9 }
  0x2c   : > { %p528_p10 = pnand %p527_p7, %p521_p11 }
  0x2e   : > { %531 = shalt.err (!%p528_p10)
}
  0x2f   : > { %s651_s30 = smov 128   ;;  %s652_s4 = smov 8  }
  0x30   : > { %431 = dma.hbm_to_vmem [thread:$0]  (!%p741_p0), %s748_s3, 384, %s750_s5, %s134_s6, %s651_s30, %s651_s30, %s652_s4  }
  0x31   : > { %p172_p12 = scmp.lt.s32.totalorder %s648_s14, 3  ;;  %s408_s7 = sshll.u32 %s735_s25, 3 }
  0x32   : > { %s409_s8 = sshll.u32 %s644_s13, 7  ;;  %p899_p9 = scmp.ge.s32.totalorder %s648_s14, 1 }
  0x33   : > { %s793_s19 = scalar_lea.hbm %s890_s1, %s409_s8  ;;  %s159_s20 = scalar_lea.vmem [#allocation5], %s408_s7 }
  0x34   : > { %p786_p11 = pnand %p899_p9, %p172_p12  ;;  %s167_s26 = sshll.u32 %s159_s20, 4  ;;  %s168_s26 = int_to_ptr.vmem [resolvable:$true] %s167_s26 }
  0x35   : > { %s156_s3 = scalar_lea.sflag [#allocation6], %s735_s25  ;;  %s532_s5 = scalar_lea.hbm %s793_s19, 128 }
  0x36   : > { %s900_s15 = scalar_select %p786_p11, 1, 0 }
  0x37   : > { %p533_p1 = scmp.ne.s32.totalorder %s793_s19, %s532_s5  ;;  %s537_s29 = scalar_lea.hbm %s890_s1, 256 }
  0x38   : > { %p538_p2 = scmp.lt.u32.totalorder %s793_s19, %s890_s1  ;;  %p539_p4 = scmp.lt.u32.totalorder %s537_s29, %s532_s5 }
  0x39   : > { %p535_p5 = pnand %p533_p1, %p504_p3  ;;  %p541_p7 = scmp.lt.u32.totalorder %s532_s5, %s793_s19 }
  0x3a   : > { %p540_p6 = por %p539_p4, %p538_p2 }
  0x3b   : > { %p536_p13 = pneg %p535_p5 }
  0x3c   : > { %p542_p10 = por %p541_p7, %p540_p6 }
  0x3e   : > { %p543_p12 = pnand %p542_p10, %p536_p13 }
  0x40   : > { %546 = shalt.err (!%p543_p12)
}
  0x41   : > { %s547_s25 = scalar_lea.vmem %s168_s26, 128  ;;  %s653_s7 = smov [#allocation5]  }
  0x42   : > { %p548_p9 = scmp.ne.s32.totalorder %s168_s26, %s547_s25  ;;  %s552_s8 = sshll.u32 %s653_s7, 4  ;;  %s553_s8 = int_to_ptr.vmem [resolvable:$false] %s552_s8 }
  0x43   : > { %s554_s16 = scalar_lea.vmem %s553_s8, 256  ;;  %p555_p8 = scmp.lt.s32.totalorder %s168_s26, %s553_s8 }
  0x44   : > { %p550_p1 = pnand %p548_p9, %p504_p3  ;;  %p556_p11 = scmp.lt.s32.totalorder %s554_s16, %s547_s25 }
  0x46   : > { %p551_p5 = pneg %p550_p1  ;;  %p557_p2 = por %p556_p11, %p555_p8 }
  0x48   : > { %p558_p4 = pnand %p557_p2, %p551_p5 }
  0x4a   : > { %561 = shalt.err (!%p558_p4)
}
  0x4b   : > { %434 = dma.hbm_to_vmem [thread:$0]  (!%p741_p0), %s793_s19, 128, %s168_s26, %s156_s3  }
  0x4c   : > { %p901_p13 = scmp.ne.s32.totalorder %s900_s15, 0 }
  0x4d   : > { %s818_s18 = sand.u32 (!%p901_p13), 1, %s632_s10   ;;  %p902_p3 = scmp.ne.s32.totalorder (!%p901_p13), %s895_s21, 0 }
  0x4e   : > { %176 = sbr.rel (%p901_p13) target bundleno = 149 (0x95), region = 28  ;;  %s179_s5 = scalar_lea.sflag (!%p901_p13), [#allocation3], %s818_s18 }
  0x4f   : > { %s421_s20 = smul.u32 (!%p901_p13), 24, %s818_s18 }
  0x51   : > { %s182_s6 = scalar_lea.vmem (!%p901_p13), [#allocation2], %s421_s20 }
  0x55   : > { %615 = dma.done.wait (%p902_p3), %s179_s5, 384  }
  0x56   : > { %617 = vsyncadd (%p902_p3), %s179_s5, 4294966912  ;;  %s411_s28 = sshll.u32 %s818_s18, 3  ;;  %s188_s15 = scalar_lea.sflag [#allocation6], %s818_s18 }
  0x57   : > { %s191_s19 = scalar_lea.vmem [#allocation5], %s411_s28 }
  0x58   : > { %619 = dma.done.wait (%p902_p3), %s188_s15, 128  }
  0x59   : > { %621 = vsyncadd (%p902_p3), %s188_s15, 4294967168  ;;  %v223_v0 = vld [vmem:[%s182_s6] sm:$0xff]  ;;  %v413_v1 = vld [vmem:[%s182_s6 + $0x8] sm:$0xff]  ;;  %v262_v17 = vlaneseq  ;;  %s416_s21 = sshll.u32 %s640_s12, 7  ;;  %s216_s26 = scalar_lea.vmem [#allocation7], %s411_s28 }
  0x5a   : > { %v414_v2 = vld [vmem:[%s182_s6 + $0x10] sm:$0xff]  ;;  %v228_v3 = vmax.f32 %v223_v0, %v413_v1  ;;  %s299_s3 = sshll.u32 %s216_s26, 4  ;;  %s840_s30 = scalar_lea.hbm %s891_s2, %s416_s21  ;;  %s842_s3 = int_to_ptr.vmem [resolvable:$true] %s299_s3 }
  0x5b   : > { %v222_v15 = vld [vmem:[%s191_s19] sm:$0xff]  ;;  %v263_v20 = vshrl.u32 %v262_v17, 7  ;;  %v265_v24 = vand.u32 127, %v262_v17  ;;  %s286_s4 = scalar_lea.sflag [#allocation4], %s818_s18  ;;  %s562_s25 = scalar_lea.vmem %s842_s3, 128 }
  0x5c   : > { %v229_v4 = vmax.f32 %v228_v3, %v414_v2  ;;  %vm234_vm0 = vcmp.eq.s32.totalorder %v222_v15, 0  ;;  %vm241_vm1 = vcmp.eq.s32.totalorder %v222_v15, 1  ;;  %vm248_vm2 = vcmp.eq.s32.totalorder %v222_v15, 2  ;;  %p563_p8 = scmp.ne.s32.totalorder %s842_s3, %s562_s25  ;;  %p903_p0 = scmp.ne.s32.totalorder %s896_s22, 0 }
  0x5d   : > { %v269_v25 = vmul.u32 128, %v263_v20  ;;  %s654_s12 = smov [#allocation7]  }
  0x5e   : > { %v230_v5 = vsub.f32 %v223_v0, %v229_v4  ;;  %v237_v6 = vsub.f32 %v413_v1, %v229_v4  ;;  %v244_v7 = vsub.f32 %v414_v2, %v229_v4  ;;  %p564_p11 = pnand %p563_p8, %p903_p0  ;;  %s566_s7 = sshll.u32 %s654_s12, 4  ;;  %s567_s7 = int_to_ptr.vmem [resolvable:$false] %s566_s7 }
  0x5f   : > { %v270_v31 = vadd.s32 %v269_v25, %v265_v24  ;;  %s568_s8 = scalar_lea.vmem %s567_s7, 256  ;;  %p569_p7 = scmp.lt.s32.totalorder %s842_s3, %s567_s7 }
  0x60   : > { %v231_v8 = vmul.f32 1.442695, %v230_v5  ;;  %v238_v9 = vmul.f32 1.442695, %v237_v6  ;;  %v245_v10 = vmul.f32 1.442695, %v244_v7  ;;  %p565_p6 = pneg %p564_p11  ;;  %p570_p10 = scmp.lt.s32.totalorder %s568_s8, %s562_s25 }
  0x61   : > { %v236_v19 = vsel %vm234_vm0, %v230_v5, 0.0  ;;  %vm271_vm3 = vcmp.lt.s32.totalorder %v270_v31, 256 }
  0x62   : > { %492 = vpow2.f32 %v231_v8  ;;  %v243_v22 = vsel %vm241_vm1, %v237_v6, %v236_v19  ;;  %p571_p12 = por %p570_p10, %p569_p7 }
  0x63   : > { %494 = vpow2.f32 %v238_v9  ;;  %v250_v28 = vsel %vm248_vm2, %v244_v7, %v243_v22 }
  0x64   : > { %496 = vpow2.f32 %v245_v10  ;;  %p572_p9 = pnand %p571_p12, %p565_p6 }
  0x6c   : > { %v493_v11 = vpop.eup %492 }
  0x6d   : > { %v495_v12 = vpop.eup %494  ;;  %v235_v18 = vsel %vm234_vm0, %v493_v11, 0.0 }
  0x6e   : > { %v497_v13 = vpop.eup %496  ;;  %v240_v14 = vadd.f32 %v495_v12, %v493_v11  ;;  %v242_v21 = vsel %vm241_vm1, %v495_v12, %v235_v18 }
  0x6f   : > { %v249_v23 = vsel %vm248_vm2, %v497_v13, %v242_v21 }
  0x70   : > { %v247_v16 = vadd.f32 %v497_v13, %v240_v14 }
  0x72   : > { %498 = vlog2.f32 %v247_v16 }
  0x73   : > { %500 = vrcp.f32 %v247_v16 }
  0x7c   : > { %v499_v26 = vpop.eup %498 }
  0x7d   : > { %v501_v27 = vpop.eup %500  ;;  %v252_v29 = vmul.f32 0.6931472, %v499_v26 }
  0x7e   : > { %v255_v30 = vmul.f32 %v501_v27, %v249_v23 }
  0x7f   : > { %v253_v32 = vsub.f32 %v252_v29, %v250_v28 }
  0x80   : > { %v256_v33 = vsub.f32 1.0, %v255_v30 }
  0x82   : > { %v257_v34 = vmul.f32 %v256_v33, %v256_v33 }
  0x84   : > { %v258_v35 = vmul.f32 %v257_v34, %v253_v32 }
  0x86   : > { %v272_v36 = vsel %vm271_vm3, %v258_v35, 0.0 }
  0x87   : > { %276 = vst [vmem:[%s216_s26] sm:$0xff] %v272_v36 }
  0x88   : > { %575 = shalt.err (!%p572_p9)
}
  0x89   : > { %s576_s16 = scalar_lea.hbm %s840_s30, 128  ;;  %s580_s5 = scalar_lea.hbm %s891_s2, 256 }
  0x8a   : > { %p577_p1 = scmp.ne.s32.totalorder %s840_s30, %s576_s16  ;;  %p581_p4 = scmp.lt.u32.totalorder %s840_s30, %s891_s2 }
  0x8b   : > { %p582_p13 = scmp.lt.u32.totalorder %s580_s5, %s576_s16  ;;  %p584_p8 = scmp.lt.u32.totalorder %s576_s16, %s840_s30 }
  0x8c   : > { %p578_p5 = pnand %p577_p1, %p903_p0 }
  0x8d   : > { %p583_p3 = por %p582_p13, %p581_p4 }
  0x8e   : > { %p579_p2 = pneg %p578_p5 }
  0x8f   : > { %p585_p11 = por %p584_p8, %p583_p3 }
  0x91   : > { %p586_p6 = pnand %p585_p11, %p579_p2 }
  0x93   : > { %589 = shalt.err (!%p586_p6)
}
  0x94   : > { %426 = dma.vmem_to_hbm [thread:$0]  (%p903_p0), %s842_s3, 128, %s840_s30, %s286_s4  }
  0x95 PF: > { %s311_s15 = sand.u32 1, %s628_s9   ;;  %p904_p7 = scmp.ne.s32.totalorder %s897_s24, 0 }
  0x96   : > { %p905_p10 = scmp.ge.s32.totalorder %s648_s14, 2  ;;  %s312_s19 = scalar_lea.sflag [#allocation4], %s311_s15 }
  0x98   : > { %p436_p12 = pnand %p905_p10, %p904_p7 }
  0x9a   : > { %623 = dma.done.wait (!%p436_p12), %s312_s19, 128  }
  0x9b   : > { %625 = vsyncadd (!%p436_p12), %s312_s19, 4294967168  ;;  %s21_s14 = sadd.s32 1, %s648_s14   ;;  %s906_s9 = smov %s632_s10 }
  0x9c   : > { %p18_p9 = scmp.ge.s32.totalorder %s21_s14, 4   ;;  %s907_s10 = smov %s636_s11 }
  0x9d   : > { %s908_s11 = smov %s726_s23  ;;  %s909_s12 = smov %s644_s13 }
  0x9e   : > { %s910_s13 = smov %s912_s17  ;;  %20 = sbr.rel (!%p18_p9) target bundleno = 8 (0x8), region = 100 }
  0xa5   :  { %317 = vsyncpa [#allocation3], 1 }
  0xa6   :  { %319 = vsyncpa [#allocation3 + $0x1], 1 }
  0xa7   :  { %320 = vsyncpa [#allocation6], 1 }
  0xa8   :  { %322 = vsyncpa [#allocation6 + $0x1], 1 }
  0xa9   :  { %323 = vsyncpa [#allocation4], 1 }
  0xaa   :  { %325 = vsyncpa [#allocation4 + $0x1], 1 }

</bundles_post_ra>
